<compile_context>
chip_gen: v7x
topology: tpu7x:2x2x1
jax: 0.10.0
libtpu: 0.0.40
codegen_flags: <defaults>
</compile_context>

<pallas_src>
import math

import jax
import jax.numpy as jnp
from jax.experimental import pallas as pl
from jax.experimental.pallas import tpu as pltpu


def _ceil_to(x, m):
    return ((x + m - 1) // m) * m


def _downsample_kernel(x_ref, w_ref, shift_ref, o_ref):
    # x_ref:     (th, Wo, Cin)            -- both strides squeezed by BlockSpec
    #        or  (th, Wo, stride, Cin)    -- small-Cin fallback (slice in-kernel)
    # w_ref:     (Cin, tn)                -- BN scale folded in (resident)
    # shift_ref: (1, tn)                  -- folded conv-bias + BN shift (f32)
    # o_ref:     (th*Wo, tn)
    x = x_ref[...]
    if x.ndim == 4:                       # W-stride group streamed: pick offset 0
        x = x[:, :, 0, :]
    th, wo, cin = x.shape
    acc = jnp.dot(x.reshape(th * wo, cin), w_ref[...],
                  preferred_element_type=jnp.float32)     # MXU, f32 accumulate
    o_ref[...] = (acc + shift_ref[...]).astype(o_ref.dtype)


def _tpu_defaults():
    """Per-generation (block_rows, vmem_limit_bytes) defaults."""
    try:
        vmem_cap = pltpu.get_tpu_info().vmem_capacity_bytes
    except Exception:
        vmem_cap = 64 * 1024 * 1024                 # conservative (v7x-sized)
    if vmem_cap >= 100 * 1024 * 1024:               # v5e / v6e: 128 MiB physical
        return 1536, 96 * 1024 * 1024
    return 512, 48 * 1024 * 1024                    # v7x: 64 MiB per TensorCore


def downsample_nhwc(x, conv_w, conv_b, bn_gamma, bn_beta, bn_mean, bn_var, *,
                    stride, eps=1e-5, block_rows=None, vmem_limit_bytes=None,
                    out_dtype=None, compute_dtype=None):
    """Fused 1x1-strided-conv + BN (inference).  x: (N, H, W, Cin) NHWC.

    compute_dtype: optionally cast activations/weights (e.g. jnp.bfloat16) for
    MXU throughput on all generations; accumulation stays f32 in-kernel.
    """
    N, H, W, Cin = x.shape
    Cout = conv_w.shape[0]
    assert conv_w.shape[2] == 1 and conv_w.shape[3] == 1, "1x1 conv expected"
    out_dtype = out_dtype if out_dtype is not None else x.dtype
    if compute_dtype is not None:
        x = x.astype(compute_dtype)

    d_rows, d_vmem = _tpu_defaults()
    block_rows = d_rows if block_rows is None else block_rows
    vmem_limit_bytes = int(d_vmem if vmem_limit_bytes is None else vmem_limit_bytes)

    Ho = pl.cdiv(H, stride)
    Wo = pl.cdiv(W, stride)
    if H != Ho * stride or W != Wo * stride:
        # Padded rows/cols land at stride-offset != 0 and are never selected.
        x = jnp.pad(x, ((0, 0), (0, Ho * stride - H), (0, Wo * stride - W), (0, 0)))

    # Pure reshape (no data movement): stride groups become explicit dims.
    x5 = x.reshape(N * Ho, stride, Wo, stride, Cin)

    in_dtype = x.dtype
    in_b = jnp.dtype(in_dtype).itemsize
    out_b = jnp.dtype(out_dtype).itemsize

    # Fold conv bias + BN into per-output-channel scale/shift; fold the scale
    # into the weight so the kernel epilogue is a single add.
    # (Note: folding into a bf16 weight trades a little precision for speed.)
    scale = (bn_gamma.astype(jnp.float32) /
             jnp.sqrt(bn_var.astype(jnp.float32) + eps))                  # (Cout,)
    bias = (jnp.zeros((Cout,), jnp.float32) if conv_b is None
            else conv_b.astype(jnp.float32))
    shift = (bias - bn_mean.astype(jnp.float32)) * scale + bn_beta.astype(jnp.float32)
    w = conv_w.reshape(Cout, Cin).T.astype(jnp.float32) * scale[None, :]   # (Cin, Cout)
    w = w.astype(in_dtype)

    # Lane-dense output: pad Cout up to a multiple of 128.
    Cout_p = max(128, _ceil_to(Cout, 128))
    if Cout_p != Cout:
        w = jnp.pad(w, ((0, 0), (0, Cout_p - Cout)))
        shift = jnp.pad(shift, (0, Cout_p - Cout))
    shift2 = shift.reshape(1, Cout_p).astype(jnp.float32)

    # W-stride handling: squeeze the stride dim out of the DMA unless the
    # contiguous run (Cin * itemsize) is tiny, where a strided DMA is slower
    # than streaming the group and slicing in-kernel.
    squeeze_w = (stride == 1) or (Cin * in_b >= 512)

    # Cout tiling (innermost parallel axis) for very large weights (v7x VMEM).
    k128 = Cout_p // 128
    tn = 128
    wt_budget = vmem_limit_bytes // 4
    for d in range(1, k128 + 1):
        if k128 % d == 0:
            cand = d * 128
            if _ceil_to(Cin, 8) * cand * in_b <= wt_budget:
                tn = cand
    gn = Cout_p // tn

    # --- M-tile sizing (models Mosaic (sublane, lane) padding of minor dims) --
    NHo = N * Ho
    M = NHo * Wo
    sub = max(8, 32 // in_b)                      # sublane tile: 8 f32 / 16 bf16
    cin_lane = _ceil_to(Cin, 128)
    if squeeze_w:
        x_row = _ceil_to(Wo, sub) * cin_lane * in_b
    else:
        x_row = Wo * _ceil_to(stride, sub) * cin_lane * in_b
    out_row = Wo * tn * out_b
    per_row = 2 * (x_row + out_row)               # double-buffered in + out
    resident = 2 * (_ceil_to(Cin, sub) * tn * in_b + sub * tn * 4)
    budget = int(0.8 * vmem_limit_bytes) - resident

    min_steps = 4 if NHo >= 8 else (2 if NHo >= 2 else 1)   # feed both v7x TCs
    th = min(NHo,
             max(1, budget // per_row),
             max(1, block_rows // max(Wo, 1)),
             pl.cdiv(NHo, min_steps))
    align = 8 // math.gcd(Wo, 8)                  # out-block rows multiple of 8
    if th >= align:
        th = (th // align) * align
    step = max(align, 1)
    best = th
    for t in range(th, max(0, th - 8 * step), -step):
        r = NHo % t
        if r == 0 or 4 * r >= 3 * t:              # exact divisor or >=75% tail
            best = t
            break
    th = max(1, best)
    gm = pl.cdiv(NHo, th)

    if squeeze_w:
        # Both stride dims squeezed: skipped H rows AND W cols never leave HBM.
        x_spec = pl.BlockSpec((th, None, Wo, None, Cin),
                              lambda i, j: (i, 0, 0, 0, 0))
        x_bytes = NHo * Wo * Cin * in_b
    else:
        x_spec = pl.BlockSpec((th, None, Wo, stride, Cin),
                              lambda i, j: (i, 0, 0, 0, 0))
        x_bytes = NHo * Wo * stride * Cin * in_b

    cost = pl.CostEstimate(
        flops=2 * M * Cin * Cout_p,
        transcendentals=0,
        bytes_accessed=(x_bytes + Cin * Cout_p * in_b + Cout_p * 4
                        + M * Cout_p * out_b))

    def _run(single_buffer):
        if single_buffer:
            w_spec = pl.BlockSpec((Cin, tn), lambda i, j: (0, j),
                                  pipeline_mode=pl.Buffered(1))
            s_spec = pl.BlockSpec((1, tn), lambda i, j: (0, j),
                                  pipeline_mode=pl.Buffered(1))
        else:
            w_spec = pl.BlockSpec((Cin, tn), lambda i, j: (0, j))
            s_spec = pl.BlockSpec((1, tn), lambda i, j: (0, j))
        return pl.pallas_call(
            _downsample_kernel,
            out_shape=jax.ShapeDtypeStruct((M, Cout_p), out_dtype),
            grid_spec=pltpu.PrefetchScalarGridSpec(
                num_scalar_prefetch=0,
                grid=(gm, gn),
                in_specs=[x_spec, w_spec, s_spec],
                out_specs=pl.BlockSpec((th * Wo, tn), lambda i, j: (i, j)),
            ),
            compiler_params=pltpu.CompilerParams(
                dimension_semantics=("parallel", "parallel"),
                vmem_limit_bytes=vmem_limit_bytes),
            cost_estimate=cost,
        )(x5, w, shift2)

    # Weight/shift block index is grid-constant only when Cout is not tiled;
    # try single-buffering them there (frees VMEM), fall back if unsupported.
    if gn == 1:
        try:
            out_flat = _run(True)
        except Exception:
            out_flat = _run(False)
    else:
        out_flat = _run(False)

    out = out_flat.reshape(N, Ho, Wo, Cout_p)
    if Cout_p != Cout:
        out = out[..., :Cout]
    return out


def downsample_forward(x_nchw, conv_w, conv_b, bn_gamma, bn_beta, bn_mean, bn_var,
                       *, stride, eps=1e-5, **kwargs):
    # Boundary-only layout conversion for parity with the PyTorch (NCHW) module.
    # Production consumers should call downsample_nhwc directly and stay NHWC.
    x = jnp.transpose(x_nchw, (0, 2, 3, 1))
    y = downsample_nhwc(x, conv_w, conv_b, bn_gamma, bn_beta, bn_mean, bn_var,
                        stride=stride, eps=eps, **kwargs)
    return jnp.transpose(y, (0, 3, 1, 2))


def _reference(x, conv_w, conv_b, bn_gamma, bn_beta, bn_mean, bn_var, *, stride, eps=1e-5):
    # Plain-JAX reference: strided 1x1 conv (NCHW) + BN inference.
    y = jax.lax.conv_general_dilated(
        x, conv_w, window_strides=(stride, stride), padding="VALID",
        dimension_numbers=("NCHW", "OIHW", "NCHW"),
        precision=jax.lax.Precision.HIGHEST)
    if conv_b is not None:
        y = y + conv_b.reshape(1, -1, 1, 1)
    inv = 1.0 / jnp.sqrt(bn_var + eps)
    return (y - bn_mean.reshape(1, -1, 1, 1)) * (bn_gamma * inv).reshape(1, -1, 1, 1) \
        + bn_beta.reshape(1, -1, 1, 1)


# TODO(synk): the `opt` runtime-override path of meta_conv2d/meta_norm and
# training-mode BN statistics are not modeled; this implements inference BN.

if __name__ == "__main__":
    key = jax.random.PRNGKey(0)
    k_x, k_w, k_g, k_b, k_m, k_v, k_x2, k_w2 = jax.random.split(key, 8)

    # ---- Case 1: small ResNet-like shapes (in=4, out=8, k=1, s=2, bias=False),
    # f32 path through the NCHW wrapper (small-Cin fallback: W-group streamed).
    N, Cin, H, W = 2, 4, 16, 16
    Cout, stride = 8, 2

    x = jax.random.normal(k_x, (N, Cin, H, W), dtype=jnp.float32)
    conv_w = jax.random.normal(k_w, (Cout, Cin, 1, 1), dtype=jnp.float32) * 0.1
    conv_b = jnp.zeros((Cout,), dtype=jnp.float32)            # bias=False in module
    bn_gamma = 1.0 + 0.1 * jax.random.normal(k_g, (Cout,), dtype=jnp.float32)
    bn_beta = 0.1 * jax.random.normal(k_b, (Cout,), dtype=jnp.float32)
    bn_mean = 0.1 * jax.random.normal(k_m, (Cout,), dtype=jnp.float32)
    bn_var = jnp.abs(jax.random.normal(k_v, (Cout,), dtype=jnp.float32)) + 0.5

    ref = _reference(x, conv_w, conv_b, bn_gamma, bn_beta, bn_mean, bn_var,
                     stride=stride)
    out = downsample_forward(x, conv_w, conv_b, bn_gamma, bn_beta, bn_mean,
                             bn_var, stride=stride)
    out = jax.block_until_ready(out)
    assert out.shape == (N, Cout, H // stride, W // stride)
    assert jnp.allclose(out, ref, atol=1e-3, rtol=1e-3)

    # ---- Case 2: bf16 streaming path (f32 accumulation in-kernel), NHWC.
    x_nhwc_bf16 = jnp.transpose(x, (0, 2, 3, 1)).astype(jnp.bfloat16)
    out_bf16 = downsample_nhwc(x_nhwc_bf16, conv_w, conv_b, bn_gamma, bn_beta,
                               bn_mean, bn_var, stride=stride)
    out_bf16 = jax.block_until_ready(out_bf16)
    ref_nhwc = jnp.transpose(ref, (0, 2, 3, 1))
    assert out_bf16.shape == ref_nhwc.shape
    assert jnp.allclose(out_bf16.astype(jnp.float32), ref_nhwc,
                        atol=1e-1, rtol=5e-2)

    # ---- Case 3: Cin large enough to take the fully-squeezed W-stride path
    # (skipped columns never leave HBM), f32 NHWC.
    Cin2, Cout2 = 128, 256
    x2 = jax.random.normal(k_x2, (N, H, W, Cin2), dtype=jnp.float32)
    conv_w2 = jax.random.normal(k_w2, (Cout2, Cin2, 1, 1), dtype=jnp.float32) * 0.1
    key2 = jax.random.PRNGKey(1)
    kg2, kb2, km2, kv2 = jax.random.split(key2, 4)
    bn_gamma2 = 1.0 + 0.1 * jax.random.normal(kg2, (Cout2,), dtype=jnp.float32)
    bn_beta2 = 0.1 * jax.random.normal(kb2, (Cout2,), dtype=jnp.float32)
    bn_mean2 = 0.1 * jax.random.normal(km2, (Cout2,), dtype=jnp.float32)
    bn_var2 = jnp.abs(jax.random.normal(kv2, (Cout2,), dtype=jnp.float32)) + 0.5

    ref2 = _reference(jnp.transpose(x2, (0, 3, 1, 2)), conv_w2, None,
                      bn_gamma2, bn_beta2, bn_mean2, bn_var2, stride=stride)
    out2 = downsample_nhwc(x2, conv_w2, None, bn_gamma2, bn_beta2, bn_mean2,
                           bn_var2, stride=stride)
    out2 = jax.block_until_ready(out2)
    assert out2.shape == (N, H // stride, W // stride, Cout2)
    assert jnp.allclose(out2, jnp.transpose(ref2, (0, 2, 3, 1)),
                        atol=1e-3, rtol=1e-3)

    print("KERNEL_OK")
</pallas_src>

<mosaic_0001>
module attributes {stable_mosaic.version = 11 : i64} {
  func.func @_downsample_kernel(%arg0: i32, %arg1: i32, %arg2: memref<4x1x8x2x4xf32, #tpu.memory_space<vmem>>, %arg3: memref<4x128xf32, #tpu.memory_space<vmem>>, %arg4: memref<1x128xf32, #tpu.memory_space<vmem>>, %arg5: memref<32x128xf32, #tpu.memory_space<vmem>>) attributes {dimension_semantics = [#tpu.dimension_semantics<parallel>, #tpu.dimension_semantics<parallel>], iteration_bounds = array<i64: 4, 1>, scalar_prefetch = 0 : i64, scratch_operands = 0 : i64, tpu.core_type = #tpu.core_type<tc>, window_params = [{transform_indices = @transform_0, window_bounds = array<i64: 4, 1, 8, 2, 4>}, {pipeline_mode = #tpu.pipeline_mode<synchronous>, transform_indices = @transform_1, window_bounds = array<i64: 4, 128>}, {pipeline_mode = #tpu.pipeline_mode<synchronous>, transform_indices = @transform_2, window_bounds = array<i64: 1, 128>}, {transform_indices = @transform_3, window_bounds = array<i64: 32, 128>}]} {
    %c0 = arith.constant 0 : index
    %c0_0 = arith.constant 0 : index
    %c0_1 = arith.constant 0 : index
    %c0_2 = arith.constant 0 : index
    %c0_3 = arith.constant 0 : index
    %0 = vector.load %arg2[%c0, %c0_0, %c0_1, %c0_2, %c0_3] : memref<4x1x8x2x4xf32, #tpu.memory_space<vmem>>, vector<4x1x8x2x4xf32>
    %1 = vector.shape_cast %0 : vector<4x1x8x2x4xf32> to vector<4x8x2x4xf32>
    %2 = vector.extract_strided_slice %1 {offsets = [0, 0, 0, 0], sizes = [4, 8, 1, 4], strides = [1, 1, 1, 1]} : vector<4x8x2x4xf32> to vector<4x8x1x4xf32>
    %3 = vector.shape_cast %2 : vector<4x8x1x4xf32> to vector<4x8x4xf32>
    %4 = vector.shape_cast %3 : vector<4x8x4xf32> to vector<32x4xf32>
    %c0_4 = arith.constant 0 : index
    %c0_5 = arith.constant 0 : index
    %5 = vector.load %arg3[%c0_4, %c0_5] : memref<4x128xf32, #tpu.memory_space<vmem>>, vector<4x128xf32>
    %cst = arith.constant dense<0.000000e+00> : vector<32x128xf32>
    %6 = tpu.matmul %4, %5, %cst {dimension_numbers = #tpu.dot_dimension_numbers<[1], [0], [0], [1], [0, 0, 1, 1], [], []>} : vector<32x4xf32>, vector<4x128xf32>, vector<32x128xf32> -> vector<32x128xf32>
    %c0_6 = arith.constant 0 : index
    %c0_7 = arith.constant 0 : index
    %7 = vector.load %arg4[%c0_6, %c0_7] : memref<1x128xf32, #tpu.memory_space<vmem>>, vector<1x128xf32>
    %8 = vector.broadcast %7 : vector<1x128xf32> to vector<32x128xf32>
    %9 = arith.addf %6, %8 : vector<32x128xf32>
    %c0_8 = arith.constant 0 : index
    %c0_9 = arith.constant 0 : index
    %10 = vector.load %arg5[%c0_8, %c0_9] : memref<32x128xf32, #tpu.memory_space<vmem>>, vector<32x128xf32>
    tpu.vector_store %arg5[%c0_8, %c0_9], %9 {strides = array<i32>} : memref<32x128xf32, #tpu.memory_space<vmem>>, vector<32x128xf32>,
    return
  }
  func.func @transform_0(%arg0: i32, %arg1: i32) -> (i32, i32, i32, i32, i32) {
    %c0_i32 = arith.constant 0 : i32
    %c0_i32_0 = arith.constant 0 : i32
    %c0_i32_1 = arith.constant 0 : i32
    %c0_i32_2 = arith.constant 0 : i32
    %c0_i32_3 = arith.constant 0 : i32
    return %arg0, %c0_i32, %c0_i32_0, %c0_i32_1, %c0_i32_2 : i32, i32, i32, i32, i32
  }
  func.func @transform_1(%arg0: i32, %arg1: i32) -> (i32, i32) {
    %c0_i32 = arith.constant 0 : i32
    %c0_i32_0 = arith.constant 0 : i32
    return %c0_i32, %arg1 : i32, i32
  }
  func.func @transform_2(%arg0: i32, %arg1: i32) -> (i32, i32) {
    %c0_i32 = arith.constant 0 : i32
    %c0_i32_0 = arith.constant 0 : i32
    return %c0_i32, %arg1 : i32, i32
  }
  func.func @transform_3(%arg0: i32, %arg1: i32) -> (i32, i32) {
    %c0_i32 = arith.constant 0 : i32
    return %arg0, %arg1 : i32, i32
  }
}

module attributes {stable_mosaic.version = 11 : i64} {
  func.func @_downsample_kernel(%arg0: i32, %arg1: i32, %arg2: memref<4x1x8x2x4xf32, #tpu.memory_space<vmem>>, %arg3: memref<4x128xf32, #tpu.memory_space<vmem>>, %arg4: memref<1x128xf32, #tpu.memory_space<vmem>>, %arg5: memref<32x128xf32, #tpu.memory_space<vmem>>) attributes {dimension_semantics = [#tpu.dimension_semantics<parallel>, #tpu.dimension_semantics<parallel>], iteration_bounds = array<i64: 4, 1>, scalar_prefetch = 0 : i64, scratch_operands = 0 : i64, tpu.core_type = #tpu.core_type<tc>, window_params = [{transform_indices = @transform_0, window_bounds = array<i64: 4, 1, 8, 2, 4>}, {transform_indices = @transform_1, window_bounds = array<i64: 4, 128>}, {transform_indices = @transform_2, window_bounds = array<i64: 1, 128>}, {transform_indices = @transform_3, window_bounds = array<i64: 32, 128>}]} {
    %c0 = arith.constant 0 : index
    %c0_0 = arith.constant 0 : index
    %c0_1 = arith.constant 0 : index
    %c0_2 = arith.constant 0 : index
    %c0_3 = arith.constant 0 : index
    %0 = vector.load %arg2[%c0, %c0_0, %c0_1, %c0_2, %c0_3] : memref<4x1x8x2x4xf32, #tpu.memory_space<vmem>>, vector<4x1x8x2x4xf32>
    %1 = vector.shape_cast %0 : vector<4x1x8x2x4xf32> to vector<4x8x2x4xf32>
    %2 = vector.extract_strided_slice %1 {offsets = [0, 0, 0, 0], sizes = [4, 8, 1, 4], strides = [1, 1, 1, 1]} : vector<4x8x2x4xf32> to vector<4x8x1x4xf32>
    %3 = vector.shape_cast %2 : vector<4x8x1x4xf32> to vector<4x8x4xf32>
    %4 = vector.shape_cast %3 : vector<4x8x4xf32> to vector<32x4xf32>
    %c0_4 = arith.constant 0 : index
    %c0_5 = arith.constant 0 : index
    %5 = vector.load %arg3[%c0_4, %c0_5] : memref<4x128xf32, #tpu.memory_space<vmem>>, vector<4x128xf32>
    %cst = arith.constant dense<0.000000e+00> : vector<32x128xf32>
    %6 = tpu.matmul %4, %5, %cst {dimension_numbers = #tpu.dot_dimension_numbers<[1], [0], [0], [1], [0, 0, 1, 1], [], []>} : vector<32x4xf32>, vector<4x128xf32>, vector<32x128xf32> -> vector<32x128xf32>
    %c0_6 = arith.constant 0 : index
    %c0_7 = arith.constant 0 : index
    %7 = vector.load %arg4[%c0_6, %c0_7] : memref<1x128xf32, #tpu.memory_space<vmem>>, vector<1x128xf32>
    %8 = vector.broadcast %7 : vector<1x128xf32> to vector<32x128xf32>
    %9 = arith.addf %6, %8 : vector<32x128xf32>
    %c0_8 = arith.constant 0 : index
    %c0_9 = arith.constant 0 : index
    %10 = vector.load %arg5[%c0_8, %c0_9] : memref<32x128xf32, #tpu.memory_space<vmem>>, vector<32x128xf32>
    tpu.vector_store %arg5[%c0_8, %c0_9], %9 {strides = array<i32>} : memref<32x128xf32, #tpu.memory_space<vmem>>, vector<32x128xf32>,
    return
  }
  func.func @transform_0(%arg0: i32, %arg1: i32) -> (i32, i32, i32, i32, i32) {
    %c0_i32 = arith.constant 0 : i32
    %c0_i32_0 = arith.constant 0 : i32
    %c0_i32_1 = arith.constant 0 : i32
    %c0_i32_2 = arith.constant 0 : i32
    %c0_i32_3 = arith.constant 0 : i32
    return %arg0, %c0_i32, %c0_i32_0, %c0_i32_1, %c0_i32_2 : i32, i32, i32, i32, i32
  }
  func.func @transform_1(%arg0: i32, %arg1: i32) -> (i32, i32) {
    %c0_i32 = arith.constant 0 : i32
    %c0_i32_0 = arith.constant 0 : i32
    return %c0_i32, %arg1 : i32, i32
  }
  func.func @transform_2(%arg0: i32, %arg1: i32) -> (i32, i32) {
    %c0_i32 = arith.constant 0 : i32
    %c0_i32_0 = arith.constant 0 : i32
    return %c0_i32, %arg1 : i32, i32
  }
  func.func @transform_3(%arg0: i32, %arg1: i32) -> (i32, i32) {
    %c0_i32 = arith.constant 0 : i32
    return %arg0, %arg1 : i32, i32
  }
}

</mosaic_0001>

<bundles_post_ra>
// kernel: tpu_custom_call.1
= control target key start
LH: loop header
LB: loop body
LE: loop exit
PB: predicated region body
PF: predicated region fallthrough
CT: control target
= control target key end

     0   :  { %8 = vsyncpa [#allocation4], 0  ;;  %s1135_s0 = inlined_call_operand.vmem [shape: f32[16,2,8,2,4], index: 0, kind: input, shape index: {}]   ;;  %s1136_s1 = inlined_call_operand.vmem [shape: f32[4,128], index: 1, kind: input, shape index: {}]   ;;  %s1137_s2 = inlined_call_operand.vmem [shape: f32[1,128], index: 2, kind: input, shape index: {}]   ;;  %s1138_s3 = inlined_call_operand.hbm [shape: f32[128,128], index: 3, kind: output, shape index: {}]  }
   0x1   :  { %10 = vsyncpa [#allocation4 + $0x1], 0  ;;  %s942_s12 = smov 0   ;;  %s944_s13 = smov 0  }
   0x2   :  { %s946_s14 = smov 0   ;;  %s948_s15 = smov 0  }
   0x3   :  { %s950_s16 = smov 0   ;;  %s952_s17 = smov 0  }
   0x4 LB: > { %s740_s18 = sadd.s32 4294967295, %s917_s17   ;;  %s741_s19 = sadd.s32 4294967294, %s917_s17   ;;  %s917_s17 = sphi %s952_s17, %s16_s17   ;;  %s913_s16 = sphi %s950_s16, %s1145_s16   ;;  %s909_s15 = sphi %s948_s15, %s1144_s15   ;;  %s905_s14 = sphi %s946_s14, %s1143_s14   ;;  %s901_s13 = sphi %s944_s13, %s1142_s13   ;;  %s897_s12 = sphi %s942_s12, %s1141_s12  }
   0x5   : > { %s28_s20 = sadd.s32 1, %s913_s16  ;;  %s35_s21 = sadd.s32 1, %s905_s14 }
   0x6   : > { %p30_p0 = scmp.ge.s32.totalorder %s28_s20, 4  ;;  %p42_p1 = scmp.ne.s32.totalorder %s905_s14, %s901_s13 }
   0x7   : > { %p43_p2 = scmp.eq.s32.totalorder %s917_s17, 0  ;;  %p126_p3 = scmp.eq.s32.totalorder %s740_s18, 3 }
   0x8   : > { %s1147_s20 = smov (%p30_p0, %s28_s20), 0  ;;  %p131_p6 = scmp.ne.s32.totalorder %s901_s13, %s897_s12 }
   0x9   : > { %p44_p4 = por %p43_p2, %p42_p1  ;;  %p981_p5 = por %p126_p3, %p42_p1 }
   0xa   : > { %s32_s23 = ssub.s32 %s913_s16, %s1147_s20  ;;  %p132_p8 = scmp.eq.s32.totalorder %s741_s19, 3 }
   0xb   : > { %p33_p7 = scmp.eq.s32.totalorder %s32_s23, 0  ;;  %p745_p10 = scmp.ge.s32.totalorder %s917_s17, 4 }
   0xc   : > { %p992_p9 = por %p132_p8, %p131_p6 }
   0xd   : > { %s990_s24 = scalar_select %p33_p7, %s905_s14, %s35_s21  }
   0xe   : > { %161 = sbr.rel (%p745_p10) target bundleno = 29 (0x1d), region = 24 }
  0x15   : > { %164 = sbr.rel (!%p44_p4) target bundleno = 29 (0x1d), region = 28  ;;  %s166_s26 = sand.u32 (%p44_p4), 1, %s905_s14  }
  0x16   : > { %s765_s27 = sshll.u32 (%p44_p4), %s913_s16, 7  ;;  %s746_s28 = sshll.u32 (%p44_p4), %s166_s26, 6 }
  0x17   : > { %s172_s4 = scalar_lea.vmem (%p44_p4), %s1135_s0, %s765_s27  ;;  %s168_s5 = scalar_lea.vmem (%p44_p4), [#allocation2], %s746_s28 }
  0x18   : > { %v188_v0 = vld [vmem:[%s172_s4] sm:$0xff] (%p44_p4)   ;;  %v196_v1 = vld [vmem:[%s172_s4 + $0x8] sm:$0xff] (%p44_p4)  }
  0x19   : > { %v204_v2 = vld [vmem:[%s172_s4 + $0x20] sm:$0xff] (%p44_p4)   ;;  %189 = vst [vmem:[%s168_s5] sm:$0xff] (%p44_p4), %v188_v0   ;;  %197 = vst [vmem:[%s168_s5 + $0x8] sm:$0xff] (%p44_p4), %v196_v1   ;;  %v212_v3 = vld [vmem:[%s172_s4 + $0x28] sm:$0xff] (%p44_p4)  }
  0x1a   : > { %205 = vst [vmem:[%s168_s5 + $0x10] sm:$0xff] (%p44_p4), %v204_v2   ;;  %v220_v4 = vld [vmem:[%s172_s4 + $0x40] sm:$0xff] (%p44_p4)   ;;  %v228_v5 = vld [vmem:[%s172_s4 + $0x48] sm:$0xff] (%p44_p4)   ;;  %213 = vst [vmem:[%s168_s5 + $0x18] sm:$0xff] (%p44_p4), %v212_v3  }
  0x1b   : > { %221 = vst [vmem:[%s168_s5 + $0x20] sm:$0xff] (%p44_p4), %v220_v4   ;;  %229 = vst [vmem:[%s168_s5 + $0x28] sm:$0xff] (%p44_p4), %v228_v5   ;;  %v236_v6 = vld [vmem:[%s172_s4 + $0x60] sm:$0xff] (%p44_p4)   ;;  %v244_v7 = vld [vmem:[%s172_s4 + $0x68] sm:$0xff] (%p44_p4)  }
  0x1c   : > { %237 = vst [vmem:[%s168_s5 + $0x30] sm:$0xff] %v236_v6   ;;  %245 = vst [vmem:[%s168_s5 + $0x38] sm:$0xff] %v244_v7  }
  0x1d PF: > { %p750_p11 = scmp.ge.s32.totalorder %s917_s17, 1  ;;  %p337_p12 = scmp.lt.s32.totalorder %s917_s17, 5 }
  0x1f   : > { %p338_p13 = pnand %p750_p11, %p337_p12 }
  0x20   : > { %v415_v8 = vld [vmem:[%s1136_s1] sm:$0xf] (!%p338_p13)  ;;  %vm527_vm0 = vcmask (!%p338_p13), 1043456   ;;  %s1008_s8 = sand.u32 (!%p338_p13), 1, %s901_s13   ;;  %vm456_vm1 = vcmask (!%p338_p13), 1041409   ;;  %vm459_vm2 = vcmask (!%p338_p13), 1042434  }
  0x21   : > { %341 = sbr.rel (%p338_p13) target bundleno = 288 (0x120), region = 69  ;;  %772 = vmatprep.subr.msk.mxu0 (!%p338_p13), %vm527_vm0, %v415_v8  ;;  %780 = vmatprep.subr.msk.mxu1 (!%p338_p13), %vm527_vm0, %v415_v8  ;;  %s751_s9 = sshll.u32 (!%p338_p13), %s1008_s8, 6  ;;  %vm462_vm3 = vcmask (!%p338_p13), 1043459   ;;  %vm465_vm4 = vcmask (!%p338_p13), 1044484   ;;  %vm468_vm5 = vcmask (!%p338_p13), 1045509   ;;  %vm471_vm6 = vcmask (!%p338_p13), 1046534  }
  0x22   : > { %773 = vmatpush3.msk.msra.mxu0 (!%p338_p13), %vm527_vm0, %v415_v8  ;;  %781 = vmatpush3.msk.msra.mxu1 (!%p338_p13), %vm527_vm0, %v415_v8  ;;  %vm474_vm7 = vcmask (!%p338_p13), 1047559   ;;  %s1011_s10 = scalar_lea.vmem (!%p338_p13), [#allocation2], %s751_s9  ;;  %vm518_vm8 = vcmask (!%p338_p13), 31744   ;;  %s752_s11 = sshll.u32 (!%p338_p13), %s1008_s8, 5 }
  0x23   : > { %v383_v9 = vld [vmem:[%s1011_s10] sm:$0x3] (!%p338_p13)  ;;  %v384_v10 = vld [vmem:[%s1011_s10 + $0x2] sm:$0x3] (!%p338_p13)  ;;  %v385_v11 = vld [vmem:[%s1011_s10 + $0x4] sm:$0x3] (!%p338_p13) }
  0x24   : > { %v386_v12 = vld [vmem:[%s1011_s10 + $0x6] sm:$0x3] (!%p338_p13)  ;;  %v387_v13 = vld [vmem:[%s1011_s10 + $0x8] sm:$0x3] (!%p338_p13)  ;;  %v388_v14 = vld [vmem:[%s1011_s10 + $0xa] sm:$0x3] (!%p338_p13) }
  0x25   : > { %v389_v15 = vld [vmem:[%s1011_s10 + $0xc] sm:$0x3] (!%p338_p13)  ;;  %v390_v16 = vld [vmem:[%s1011_s10 + $0xe] sm:$0x3] (!%p338_p13)  ;;  %v455_v17 = vrot.slane (!%p338_p13), %v384_v10, 7  ;;  %v458_v18 = vrot.slane (!%p338_p13), %v385_v11, 6 }
  0x26   : > { %v461_v19 = vrot.slane (!%p338_p13), %v386_v12, 5  ;;  %v464_v20 = vrot.slane (!%p338_p13), %v387_v13, 4  ;;  %v467_v21 = vrot.slane (!%p338_p13), %v388_v14, 3  ;;  %v399_v22 = vld [vmem:[%s1011_s10 + $0x20] sm:$0x3] (!%p338_p13)  ;;  %v470_v24 = vrot.slane (!%p338_p13), %v389_v15, 2 }
  0x27   : > { %v457_v23 = vsel (!%p338_p13), %vm456_vm1, %v455_v17, %v383_v9  ;;  %v473_v25 = vrot.slane (!%p338_p13), %v390_v16, 1  ;;  %v400_v26 = vld [vmem:[%s1011_s10 + $0x22] sm:$0x3] (!%p338_p13)  ;;  %v401_v27 = vld [vmem:[%s1011_s10 + $0x24] sm:$0x3] (!%p338_p13)  ;;  %s373_s21 = scalar_lea.vmem (!%p338_p13), [#allocation3], %s752_s11 }
  0x28   : > { %v460_v28 = vsel %vm459_vm2, %v458_v18, %v457_v23  ;;  %v402_v29 = vld [vmem:[%s1011_s10 + $0x26] sm:$0x3]  ;;  %v403_v30 = vld [vmem:[%s1011_s10 + $0x28] sm:$0x3]  ;;  %v404_v31 = vld [vmem:[%s1011_s10 + $0x2a] sm:$0x3] }
  0x29   : > { %v463_v32 = vsel %vm462_vm3, %v461_v19, %v460_v28  ;;  %v405_v33 = vld [vmem:[%s1011_s10 + $0x2c] sm:$0x3]  ;;  %v406_v34 = vld [vmem:[%s1011_s10 + $0x2e] sm:$0x3]  ;;  %v490_v35 = vrot.slane %v400_v26, 7  ;;  %v492_v36 = vrot.slane %v401_v27, 6 }
  0x2a   : > { %v466_v37 = vsel %vm465_vm4, %v464_v20, %v463_v32  ;;  %v494_v38 = vrot.slane %v402_v29, 5  ;;  %v496_v39 = vrot.slane %v403_v30, 4  ;;  %v498_v40 = vrot.slane %v404_v31, 3  ;;  %v391_v41 = vld [vmem:[%s1011_s10 + $0x10] sm:$0x3]  ;;  %s635_s23 = sshll.u32 %s373_s21, 4  ;;  %s1082_s23 = int_to_ptr.vmem [resolvable:$true] %s635_s23 }
  0x2b   : > { %v469_v42 = vsel %vm468_vm5, %v467_v21, %v466_v37  ;;  %v491_v43 = vsel %vm456_vm1, %v490_v35, %v399_v22  ;;  %v500_v44 = vrot.slane %v405_v33, 2  ;;  %v502_v45 = vrot.slane %v406_v34, 1  ;;  %v392_v46 = vld [vmem:[%s1011_s10 + $0x12] sm:$0x3]  ;;  %v393_v47 = vld [vmem:[%s1011_s10 + $0x14] sm:$0x3] }
  0x2c   : > { %v472_v48 = vsel %vm471_vm6, %v470_v24, %v469_v42  ;;  %v493_v49 = vsel %vm459_vm2, %v492_v36, %v491_v43  ;;  %v394_v50 = vld [vmem:[%s1011_s10 + $0x16] sm:$0x3]  ;;  %v395_v51 = vld [vmem:[%s1011_s10 + $0x18] sm:$0x3]  ;;  %v396_v52 = vld [vmem:[%s1011_s10 + $0x1a] sm:$0x3] }
  0x2d   : > { %v475_v53 = vsel %vm474_vm7, %v473_v25, %v472_v48  ;;  %v495_v54 = vsel %vm462_vm3, %v494_v38, %v493_v49  ;;  %v397_v55 = vld [vmem:[%s1011_s10 + $0x1c] sm:$0x3]  ;;  %v398_v56 = vld [vmem:[%s1011_s10 + $0x1e] sm:$0x3]  ;;  %v476_v57 = vrot.slane %v392_v46, 7  ;;  %v478_v58 = vrot.slane %v393_v47, 6 }
  0x2e   : > { %774 = vmatprep.mubr.msk.f32.mxu0 %vm518_vm8, %v475_v53  ;;  %v497_v59 = vsel %vm465_vm4, %v496_v39, %v495_v54  ;;  %v480_v60 = vrot.slane %v394_v50, 5  ;;  %v482_v61 = vrot.slane %v395_v51, 4  ;;  %v484_v62 = vrot.slane %v396_v52, 3  ;;  %v407_v63 = vld [vmem:[%s1011_s10 + $0x30] sm:$0x3]  ;;  %s766_s26 = sshll.u32 %s909_s15, 9 }
  0x2f   : > { %v499_v0 = vsel %vm468_vm5, %v498_v40, %v497_v59  ;;  %v477_v1 = vsel %vm456_vm1, %v476_v57, %v391_v41  ;;  %v486_v2 = vrot.slane %v397_v55, 2  ;;  %v488_v3 = vrot.slane %v398_v56, 1  ;;  %v408_v4 = vld [vmem:[%s1011_s10 + $0x32] sm:$0x3]  ;;  %v409_v5 = vld [vmem:[%s1011_s10 + $0x34] sm:$0x3]  ;;  %s1087_s29 = scalar_lea.hbm %s1138_s3, %s766_s26 }
  0x30   : > { %v501_v6 = vsel %vm471_vm6, %v500_v44, %v499_v0  ;;  %v479_v7 = vsel %vm459_vm2, %v478_v58, %v477_v1  ;;  %v410_v8 = vld [vmem:[%s1011_s10 + $0x36] sm:$0x3]  ;;  %v411_v9 = vld [vmem:[%s1011_s10 + $0x38] sm:$0x3]  ;;  %v412_v10 = vld [vmem:[%s1011_s10 + $0x3a] sm:$0x3] }
  0x31   : > { %v503_v11 = vsel %vm474_vm7, %v502_v45, %v501_v6  ;;  %v481_v12 = vsel %vm462_vm3, %v480_v60, %v479_v7  ;;  %v413_v13 = vld [vmem:[%s1011_s10 + $0x3c] sm:$0x3]  ;;  %v504_v14 = vrot.slane %v408_v4, 7  ;;  %v506_v15 = vrot.slane %v409_v5, 6  ;;  %v414_v17 = vld [vmem:[%s1011_s10 + $0x3e] sm:$0x3] }
  0x32   : > { %777 = vmatprep.mubr.msk.f32.mxu1 %vm518_vm8, %v503_v11  ;;  %v483_v16 = vsel %vm465_vm4, %v482_v61, %v481_v12  ;;  %v508_v18 = vrot.slane %v410_v8, 5  ;;  %v510_v19 = vrot.slane %v411_v9, 4  ;;  %v512_v22 = vrot.slane %v412_v10, 3  ;;  %v753_v33 = vld [vmem:[%s1137_s2] ss:$0 sm:$0xff]  ;;  %s621_s30 = scalar_lea.sflag [#allocation4], %s1008_s8 }
  0x33   : > { %v485_v20 = vsel %vm468_vm5, %v484_v62, %v483_v16  ;;  %v505_v21 = vsel %vm456_vm1, %v504_v14, %v407_v63  ;;  %v514_v25 = vrot.slane %v413_v13, 2  ;;  %v516_v28 = vrot.slane %v414_v17, 1  ;;  %s839_s15 = scalar_lea.vmem %s1082_s23, 512  ;;  %s919_s4 = smov [#allocation3]  }
  0x34   : > { %v487_v23 = vsel %vm471_vm6, %v486_v2, %v485_v20  ;;  %v507_v24 = vsel %vm459_vm2, %v506_v15, %v505_v21  ;;  %p840_p0 = scmp.ne.s32.totalorder %s1082_s23, %s839_s15  ;;  %s843_s5 = sshll.u32 %s919_s4, 4  ;;  %s844_s5 = int_to_ptr.vmem [resolvable:$false] %s843_s5 }
  0x35   : > { %v489_v26 = vsel %vm474_vm7, %v488_v3, %v487_v23  ;;  %v509_v27 = vsel %vm462_vm3, %v508_v18, %v507_v24  ;;  %s845_s6 = scalar_lea.vmem %s844_s5, 1024  ;;  %p846_p3 = scmp.lt.s32.totalorder %s1082_s23, %s844_s5 }
  0x36   : > { %775 = vmatmul.mubr.msk.f32.vlgmr.msra.gmra.mrb[0].mxu0 %vm518_vm8, %v489_v26  ;;  %v511_v29 = vsel %vm465_vm4, %v510_v19, %v509_v27  ;;  %p841_p1 = pnand %p840_p0, %p981_p5  ;;  %p847_p4 = scmp.lt.s32.totalorder %s845_s6, %s839_s15 }
  0x37   : > { %v513_v30 = vsel %vm468_vm5, %v512_v22, %v511_v29 }
  0x38   : > { %v515_v31 = vsel %vm471_vm6, %v514_v25, %v513_v30  ;;  %p842_p2 = pneg %p841_p1  ;;  %p848_p6 = por %p847_p4, %p846_p3 }
  0x39   : > { %v517_v32 = vsel %vm474_vm7, %v516_v28, %v515_v31 }
  0x3a   : > { %778 = vmatmul.mubr.msk.f32.vlgmr.msra.gmra.mrb[0].mxu1 %vm518_vm8, %v517_v32  ;;  %p849_p7 = pnand %p848_p6, %p842_p2 }
 0x109   : > { %v776_v34 = vpop.f32.mrb[0].mxu0 }
 0x10a   : > { %v603_v35 = vadd.f32 %v776_v34, %v753_v33  ;;  %v597_v36 = vpop.f32.mrb[1].mxu0 }
 0x10b   : > { %v598_v37 = vadd.f32 %v753_v33, %v597_v36 }
 0x10c   : > { %617 = vst [vmem:[%s373_s21 + $0x8] sm:$0xff] %v603_v35 }
 0x10d   : > { %v779_v38 = vpop.f32.mrb[0].mxu1  ;;  %616 = vst [vmem:[%s373_s21] sm:$0xff] %v598_v37 }
 0x10e   : > { %v613_v39 = vadd.f32 %v779_v38, %v753_v33  ;;  %v607_v40 = vpop.f32.mrb[1].mxu1 }
 0x10f   : > { %v608_v41 = vadd.f32 %v753_v33, %v607_v40 }
 0x110   : > { %619 = vst [vmem:[%s373_s21 + $0x18] sm:$0xff] %v613_v39 }
 0x111   : > { %618 = vst [vmem:[%s373_s21 + $0x10] sm:$0xff] %v608_v41 }
 0x112   : > { %852 = shalt.err (!%p849_p7)
}
 0x113   : > { %s853_s7 = scalar_lea.hbm %s1087_s29, 512  ;;  %s857_s11 = scalar_lea.hbm %s1138_s3, 2048 }
 0x114   : > { %p854_p8 = scmp.ne.s32.totalorder %s1087_s29, %s853_s7  ;;  %p858_p12 = scmp.lt.u32.totalorder %s1087_s29, %s1138_s3 }
 0x115   : > { %p859_p13 = scmp.lt.u32.totalorder %s857_s11, %s853_s7  ;;  %p861_p1 = scmp.lt.u32.totalorder %s853_s7, %s1087_s29 }
 0x116   : > { %p855_p10 = pnand %p854_p8, %p981_p5 }
 0x117   : > { %p860_p0 = por %p859_p13, %p858_p12 }
 0x118   : > { %p856_p11 = pneg %p855_p10 }
 0x119   : > { %p862_p2 = por %p861_p1, %p860_p0 }
 0x11b   : > { %p863_p3 = pnand %p862_p2, %p856_p11 }
 0x11d   : > { %866 = shalt.err (!%p863_p3)
}
 0x11e   : > { %s920_s21 = smov 128   ;;  %s921_s26 = smov 8  }
 0x11f   : > { %782 = dma.vmem_to_hbm [thread:$0]  (%p981_p5), %s1082_s23, 512, %s1087_s29, %s621_s30, %s920_s21, %s920_s21, %s921_s26  }
 0x120 PF: > { %p788_p4 = scmp.ge.s32.totalorder %s917_s17, 2  ;;  %s650_s27 = sand.u32 1, %s897_s12  }
 0x121   : > { %s651_s28 = scalar_lea.sflag [#allocation4], %s650_s27 }
 0x122   : > { %p785_p6 = pnand %p788_p4, %p992_p9 }
 0x124   : > { %892 = dma.done.wait (!%p785_p6), %s651_s28, 512  }
 0x125   : > { %894 = vsyncadd (!%p785_p6), %s651_s28, 4294966784  ;;  %s16_s17 = sadd.s32 1, %s917_s17   ;;  %s1141_s12 = smov %s901_s13 }
 0x126   : > { %p13_p7 = scmp.ge.s32.totalorder %s16_s17, 6   ;;  %s1142_s13 = smov %s905_s14 }
 0x127   : > { %s1143_s14 = smov %s990_s24  ;;  %s1144_s15 = smov %s913_s16 }
 0x128   : > { %s1145_s16 = smov %s1147_s20  ;;  %15 = sbr.rel (!%p13_p7) target bundleno = 4 (0x4), region = 119 }
 0x12f   :  { %656 = vsyncpa [#allocation4], 1 }
 0x130   :  { %658 = vsyncpa [#allocation4 + $0x1], 1 }

// kernel: tpu_custom_call.1
= control target key start
LH: loop header
LB: loop body
LE: loop exit
PB: predicated region body
PF: predicated region fallthrough
CT: control target
= control target key end

     0   :  { %8 = vsyncpa [#allocation4], 0  ;;  %s1135_s0 = inlined_call_operand.vmem [shape: f32[16,2,8,2,4], index: 0, kind: input, shape index: {}]   ;;  %s1136_s1 = inlined_call_operand.vmem [shape: f32[4,128], index: 1, kind: input, shape index: {}]   ;;  %s1137_s2 = inlined_call_operand.vmem [shape: f32[1,128], index: 2, kind: input, shape index: {}]   ;;  %s1138_s3 = inlined_call_operand.hbm [shape: f32[128,128], index: 3, kind: output, shape index: {}]  }
   0x1   :  { %10 = vsyncpa [#allocation4 + $0x1], 0  ;;  %s942_s12 = smov 0   ;;  %s944_s13 = smov 0  }
   0x2   :  { %s946_s14 = smov 0   ;;  %s948_s15 = smov 0  }
   0x3   :  { %s950_s16 = smov 0   ;;  %s952_s17 = smov 0  }
   0x4 LB: > { %s740_s18 = sadd.s32 4294967295, %s917_s17   ;;  %s741_s19 = sadd.s32 4294967294, %s917_s17   ;;  %s917_s17 = sphi %s952_s17, %s16_s17   ;;  %s913_s16 = sphi %s950_s16, %s1145_s16   ;;  %s909_s15 = sphi %s948_s15, %s1144_s15   ;;  %s905_s14 = sphi %s946_s14, %s1143_s14   ;;  %s901_s13 = sphi %s944_s13, %s1142_s13   ;;  %s897_s12 = sphi %s942_s12, %s1141_s12  }
   0x5   : > { %s28_s20 = sadd.s32 1, %s913_s16  ;;  %s35_s21 = sadd.s32 1, %s905_s14 }
   0x6   : > { %p30_p0 = scmp.ge.s32.totalorder %s28_s20, 4  ;;  %p42_p1 = scmp.ne.s32.totalorder %s905_s14, %s901_s13 }
   0x7   : > { %p43_p2 = scmp.eq.s32.totalorder %s917_s17, 0  ;;  %p126_p3 = scmp.eq.s32.totalorder %s740_s18, 3 }
   0x8   : > { %s1147_s20 = smov (%p30_p0, %s28_s20), 0  ;;  %p131_p6 = scmp.ne.s32.totalorder %s901_s13, %s897_s12 }
   0x9   : > { %p44_p4 = por %p43_p2, %p42_p1  ;;  %p981_p5 = por %p126_p3, %p42_p1 }
   0xa   : > { %s32_s23 = ssub.s32 %s913_s16, %s1147_s20  ;;  %p132_p8 = scmp.eq.s32.totalorder %s741_s19, 3 }
   0xb   : > { %p33_p7 = scmp.eq.s32.totalorder %s32_s23, 0  ;;  %p745_p10 = scmp.ge.s32.totalorder %s917_s17, 4 }
   0xc   : > { %p992_p9 = por %p132_p8, %p131_p6 }
   0xd   : > { %s990_s24 = scalar_select %p33_p7, %s905_s14, %s35_s21  }
   0xe   : > { %161 = sbr.rel (%p745_p10) target bundleno = 29 (0x1d), region = 24 }
  0x15   : > { %164 = sbr.rel (!%p44_p4) target bundleno = 29 (0x1d), region = 28  ;;  %s166_s26 = sand.u32 (%p44_p4), 1, %s905_s14  }
  0x16   : > { %s765_s27 = sshll.u32 (%p44_p4), %s913_s16, 7  ;;  %s746_s28 = sshll.u32 (%p44_p4), %s166_s26, 6 }
  0x17   : > { %s172_s4 = scalar_lea.vmem (%p44_p4), %s1135_s0, %s765_s27  ;;  %s168_s5 = scalar_lea.vmem (%p44_p4), [#allocation2], %s746_s28 }
  0x18   : > { %v188_v0 = vld [vmem:[%s172_s4] sm:$0xff] (%p44_p4)   ;;  %v196_v1 = vld [vmem:[%s172_s4 + $0x8] sm:$0xff] (%p44_p4)  }
  0x19   : > { %v204_v2 = vld [vmem:[%s172_s4 + $0x20] sm:$0xff] (%p44_p4)   ;;  %189 = vst [vmem:[%s168_s5] sm:$0xff] (%p44_p4), %v188_v0   ;;  %197 = vst [vmem:[%s168_s5 + $0x8] sm:$0xff] (%p44_p4), %v196_v1   ;;  %v212_v3 = vld [vmem:[%s172_s4 + $0x28] sm:$0xff] (%p44_p4)  }
  0x1a   : > { %205 = vst [vmem:[%s168_s5 + $0x10] sm:$0xff] (%p44_p4), %v204_v2   ;;  %v220_v4 = vld [vmem:[%s172_s4 + $0x40] sm:$0xff] (%p44_p4)   ;;  %v228_v5 = vld [vmem:[%s172_s4 + $0x48] sm:$0xff] (%p44_p4)   ;;  %213 = vst [vmem:[%s168_s5 + $0x18] sm:$0xff] (%p44_p4), %v212_v3  }
  0x1b   : > { %221 = vst [vmem:[%s168_s5 + $0x20] sm:$0xff] (%p44_p4), %v220_v4   ;;  %229 = vst [vmem:[%s168_s5 + $0x28] sm:$0xff] (%p44_p4), %v228_v5   ;;  %v236_v6 = vld [vmem:[%s172_s4 + $0x60] sm:$0xff] (%p44_p4)   ;;  %v244_v7 = vld [vmem:[%s172_s4 + $0x68] sm:$0xff] (%p44_p4)  }
  0x1c   : > { %237 = vst [vmem:[%s168_s5 + $0x30] sm:$0xff] %v236_v6   ;;  %245 = vst [vmem:[%s168_s5 + $0x38] sm:$0xff] %v244_v7  }
  0x1d PF: > { %p750_p11 = scmp.ge.s32.totalorder %s917_s17, 1  ;;  %p337_p12 = scmp.lt.s32.totalorder %s917_s17, 5 }
  0x1f   : > { %p338_p13 = pnand %p750_p11, %p337_p12 }
  0x20   : > { %v415_v8 = vld [vmem:[%s1136_s1] sm:$0xf] (!%p338_p13)  ;;  %vm527_vm0 = vcmask (!%p338_p13), 1043456   ;;  %s1008_s8 = sand.u32 (!%p338_p13), 1, %s901_s13   ;;  %vm456_vm1 = vcmask (!%p338_p13), 1041409   ;;  %vm459_vm2 = vcmask (!%p338_p13), 1042434  }
  0x21   : > { %341 = sbr.rel (%p338_p13) target bundleno = 288 (0x120), region = 69  ;;  %772 = vmatprep.subr.msk.mxu0 (!%p338_p13), %vm527_vm0, %v415_v8  ;;  %780 = vmatprep.subr.msk.mxu1 (!%p338_p13), %vm527_vm0, %v415_v8  ;;  %s751_s9 = sshll.u32 (!%p338_p13), %s1008_s8, 6  ;;  %vm462_vm3 = vcmask (!%p338_p13), 1043459   ;;  %vm465_vm4 = vcmask (!%p338_p13), 1044484   ;;  %vm468_vm5 = vcmask (!%p338_p13), 1045509   ;;  %vm471_vm6 = vcmask (!%p338_p13), 1046534  }
  0x22   : > { %773 = vmatpush3.msk.msra.mxu0 (!%p338_p13), %vm527_vm0, %v415_v8  ;;  %781 = vmatpush3.msk.msra.mxu1 (!%p338_p13), %vm527_vm0, %v415_v8  ;;  %vm474_vm7 = vcmask (!%p338_p13), 1047559   ;;  %s1011_s10 = scalar_lea.vmem (!%p338_p13), [#allocation2], %s751_s9  ;;  %vm518_vm8 = vcmask (!%p338_p13), 31744   ;;  %s752_s11 = sshll.u32 (!%p338_p13), %s1008_s8, 5 }
  0x23   : > { %v383_v9 = vld [vmem:[%s1011_s10] sm:$0x3] (!%p338_p13)  ;;  %v384_v10 = vld [vmem:[%s1011_s10 + $0x2] sm:$0x3] (!%p338_p13)  ;;  %v385_v11 = vld [vmem:[%s1011_s10 + $0x4] sm:$0x3] (!%p338_p13) }
  0x24   : > { %v386_v12 = vld [vmem:[%s1011_s10 + $0x6] sm:$0x3] (!%p338_p13)  ;;  %v387_v13 = vld [vmem:[%s1011_s10 + $0x8] sm:$0x3] (!%p338_p13)  ;;  %v388_v14 = vld [vmem:[%s1011_s10 + $0xa] sm:$0x3] (!%p338_p13) }
  0x25   : > { %v389_v15 = vld [vmem:[%s1011_s10 + $0xc] sm:$0x3] (!%p338_p13)  ;;  %v390_v16 = vld [vmem:[%s1011_s10 + $0xe] sm:$0x3] (!%p338_p13)  ;;  %v455_v17 = vrot.slane (!%p338_p13), %v384_v10, 7  ;;  %v458_v18 = vrot.slane (!%p338_p13), %v385_v11, 6 }
  0x26   : > { %v461_v19 = vrot.slane (!%p338_p13), %v386_v12, 5  ;;  %v464_v20 = vrot.slane (!%p338_p13), %v387_v13, 4  ;;  %v467_v21 = vrot.slane (!%p338_p13), %v388_v14, 3  ;;  %v399_v22 = vld [vmem:[%s1011_s10 + $0x20] sm:$0x3] (!%p338_p13)  ;;  %v470_v24 = vrot.slane (!%p338_p13), %v389_v15, 2 }
  0x27   : > { %v457_v23 = vsel (!%p338_p13), %vm456_vm1, %v455_v17, %v383_v9  ;;  %v473_v25 = vrot.slane (!%p338_p13), %v390_v16, 1  ;;  %v400_v26 = vld [vmem:[%s1011_s10 + $0x22] sm:$0x3] (!%p338_p13)  ;;  %v401_v27 = vld [vmem:[%s1011_s10 + $0x24] sm:$0x3] (!%p338_p13)  ;;  %s373_s21 = scalar_lea.vmem (!%p338_p13), [#allocation3], %s752_s11 }
  0x28   : > { %v460_v28 = vsel %vm459_vm2, %v458_v18, %v457_v23  ;;  %v402_v29 = vld [vmem:[%s1011_s10 + $0x26] sm:$0x3]  ;;  %v403_v30 = vld [vmem:[%s1011_s10 + $0x28] sm:$0x3]  ;;  %v404_v31 = vld [vmem:[%s1011_s10 + $0x2a] sm:$0x3] }
  0x29   : > { %v463_v32 = vsel %vm462_vm3, %v461_v19, %v460_v28  ;;  %v405_v33 = vld [vmem:[%s1011_s10 + $0x2c] sm:$0x3]  ;;  %v406_v34 = vld [vmem:[%s1011_s10 + $0x2e] sm:$0x3]  ;;  %v490_v35 = vrot.slane %v400_v26, 7  ;;  %v492_v36 = vrot.slane %v401_v27, 6 }
  0x2a   : > { %v466_v37 = vsel %vm465_vm4, %v464_v20, %v463_v32  ;;  %v494_v38 = vrot.slane %v402_v29, 5  ;;  %v496_v39 = vrot.slane %v403_v30, 4  ;;  %v498_v40 = vrot.slane %v404_v31, 3  ;;  %v391_v41 = vld [vmem:[%s1011_s10 + $0x10] sm:$0x3]  ;;  %s635_s23 = sshll.u32 %s373_s21, 4  ;;  %s1082_s23 = int_to_ptr.vmem [resolvable:$true] %s635_s23 }
  0x2b   : > { %v469_v42 = vsel %vm468_vm5, %v467_v21, %v466_v37  ;;  %v491_v43 = vsel %vm456_vm1, %v490_v35, %v399_v22  ;;  %v500_v44 = vrot.slane %v405_v33, 2  ;;  %v502_v45 = vrot.slane %v406_v34, 1  ;;  %v392_v46 = vld [vmem:[%s1011_s10 + $0x12] sm:$0x3]  ;;  %v393_v47 = vld [vmem:[%s1011_s10 + $0x14] sm:$0x3] }
  0x2c   : > { %v472_v48 = vsel %vm471_vm6, %v470_v24, %v469_v42  ;;  %v493_v49 = vsel %vm459_vm2, %v492_v36, %v491_v43  ;;  %v394_v50 = vld [vmem:[%s1011_s10 + $0x16] sm:$0x3]  ;;  %v395_v51 = vld [vmem:[%s1011_s10 + $0x18] sm:$0x3]  ;;  %v396_v52 = vld [vmem:[%s1011_s10 + $0x1a] sm:$0x3] }
  0x2d   : > { %v475_v53 = vsel %vm474_vm7, %v473_v25, %v472_v48  ;;  %v495_v54 = vsel %vm462_vm3, %v494_v38, %v493_v49  ;;  %v397_v55 = vld [vmem:[%s1011_s10 + $0x1c] sm:$0x3]  ;;  %v398_v56 = vld [vmem:[%s1011_s10 + $0x1e] sm:$0x3]  ;;  %v476_v57 = vrot.slane %v392_v46, 7  ;;  %v478_v58 = vrot.slane %v393_v47, 6 }
  0x2e   : > { %774 = vmatprep.mubr.msk.f32.mxu0 %vm518_vm8, %v475_v53  ;;  %v497_v59 = vsel %vm465_vm4, %v496_v39, %v495_v54  ;;  %v480_v60 = vrot.slane %v394_v50, 5  ;;  %v482_v61 = vrot.slane %v395_v51, 4  ;;  %v484_v62 = vrot.slane %v396_v52, 3  ;;  %v407_v63 = vld [vmem:[%s1011_s10 + $0x30] sm:$0x3]  ;;  %s766_s26 = sshll.u32 %s909_s15, 9 }
  0x2f   : > { %v499_v0 = vsel %vm468_vm5, %v498_v40, %v497_v59  ;;  %v477_v1 = vsel %vm456_vm1, %v476_v57, %v391_v41  ;;  %v486_v2 = vrot.slane %v397_v55, 2  ;;  %v488_v3 = vrot.slane %v398_v56, 1  ;;  %v408_v4 = vld [vmem:[%s1011_s10 + $0x32] sm:$0x3]  ;;  %v409_v5 = vld [vmem:[%s1011_s10 + $0x34] sm:$0x3]  ;;  %s1087_s29 = scalar_lea.hbm %s1138_s3, %s766_s26 }
  0x30   : > { %v501_v6 = vsel %vm471_vm6, %v500_v44, %v499_v0  ;;  %v479_v7 = vsel %vm459_vm2, %v478_v58, %v477_v1  ;;  %v410_v8 = vld [vmem:[%s1011_s10 + $0x36] sm:$0x3]  ;;  %v411_v9 = vld [vmem:[%s1011_s10 + $0x38] sm:$0x3]  ;;  %v412_v10 = vld [vmem:[%s1011_s10 + $0x3a] sm:$0x3] }
  0x31   : > { %v503_v11 = vsel %vm474_vm7, %v502_v45, %v501_v6  ;;  %v481_v12 = vsel %vm462_vm3, %v480_v60, %v479_v7  ;;  %v413_v13 = vld [vmem:[%s1011_s10 + $0x3c] sm:$0x3]  ;;  %v504_v14 = vrot.slane %v408_v4, 7  ;;  %v506_v15 = vrot.slane %v409_v5, 6  ;;  %v414_v17 = vld [vmem:[%s1011_s10 + $0x3e] sm:$0x3] }
  0x32   : > { %777 = vmatprep.mubr.msk.f32.mxu1 %vm518_vm8, %v503_v11  ;;  %v483_v16 = vsel %vm465_vm4, %v482_v61, %v481_v12  ;;  %v508_v18 = vrot.slane %v410_v8, 5  ;;  %v510_v19 = vrot.slane %v411_v9, 4  ;;  %v512_v22 = vrot.slane %v412_v10, 3  ;;  %v753_v33 = vld [vmem:[%s1137_s2] ss:$0 sm:$0xff]  ;;  %s621_s30 = scalar_lea.sflag [#allocation4], %s1008_s8 }
  0x33   : > { %v485_v20 = vsel %vm468_vm5, %v484_v62, %v483_v16  ;;  %v505_v21 = vsel %vm456_vm1, %v504_v14, %v407_v63  ;;  %v514_v25 = vrot.slane %v413_v13, 2  ;;  %v516_v28 = vrot.slane %v414_v17, 1  ;;  %s839_s15 = scalar_lea.vmem %s1082_s23, 512  ;;  %s919_s4 = smov [#allocation3]  }
  0x34   : > { %v487_v23 = vsel %vm471_vm6, %v486_v2, %v485_v20  ;;  %v507_v24 = vsel %vm459_vm2, %v506_v15, %v505_v21  ;;  %p840_p0 = scmp.ne.s32.totalorder %s1082_s23, %s839_s15  ;;  %s843_s5 = sshll.u32 %s919_s4, 4  ;;  %s844_s5 = int_to_ptr.vmem [resolvable:$false] %s843_s5 }
  0x35   : > { %v489_v26 = vsel %vm474_vm7, %v488_v3, %v487_v23  ;;  %v509_v27 = vsel %vm462_vm3, %v508_v18, %v507_v24  ;;  %s845_s6 = scalar_lea.vmem %s844_s5, 1024  ;;  %p846_p3 = scmp.lt.s32.totalorder %s1082_s23, %s844_s5 }
  0x36   : > { %775 = vmatmul.mubr.msk.f32.vlgmr.msra.gmra.mrb[0].mxu0 %vm518_vm8, %v489_v26  ;;  %v511_v29 = vsel %vm465_vm4, %v510_v19, %v509_v27  ;;  %p841_p1 = pnand %p840_p0, %p981_p5  ;;  %p847_p4 = scmp.lt.s32.totalorder %s845_s6, %s839_s15 }
  0x37   : > { %v513_v30 = vsel %vm468_vm5, %v512_v22, %v511_v29 }
  0x38   : > { %v515_v31 = vsel %vm471_vm6, %v514_v25, %v513_v30  ;;  %p842_p2 = pneg %p841_p1  ;;  %p848_p6 = por %p847_p4, %p846_p3 }
  0x39   : > { %v517_v32 = vsel %vm474_vm7, %v516_v28, %v515_v31 }
  0x3a   : > { %778 = vmatmul.mubr.msk.f32.vlgmr.msra.gmra.mrb[0].mxu1 %vm518_vm8, %v517_v32  ;;  %p849_p7 = pnand %p848_p6, %p842_p2 }
 0x109   : > { %v776_v34 = vpop.f32.mrb[0].mxu0 }
 0x10a   : > { %v603_v35 = vadd.f32 %v776_v34, %v753_v33  ;;  %v597_v36 = vpop.f32.mrb[1].mxu0 }
 0x10b   : > { %v598_v37 = vadd.f32 %v753_v33, %v597_v36 }
 0x10c   : > { %617 = vst [vmem:[%s373_s21 + $0x8] sm:$0xff] %v603_v35 }
 0x10d   : > { %v779_v38 = vpop.f32.mrb[0].mxu1  ;;  %616 = vst [vmem:[%s373_s21] sm:$0xff] %v598_v37 }
 0x10e   : > { %v613_v39 = vadd.f32 %v779_v38, %v753_v33  ;;  %v607_v40 = vpop.f32.mrb[1].mxu1 }
 0x10f   : > { %v608_v41 = vadd.f32 %v753_v33, %v607_v40 }
 0x110   : > { %619 = vst [vmem:[%s373_s21 + $0x18] sm:$0xff] %v613_v39 }
 0x111   : > { %618 = vst [vmem:[%s373_s21 + $0x10] sm:$0xff] %v608_v41 }
 0x112   : > { %852 = shalt.err (!%p849_p7)
}
 0x113   : > { %s853_s7 = scalar_lea.hbm %s1087_s29, 512  ;;  %s857_s11 = scalar_lea.hbm %s1138_s3, 2048 }
 0x114   : > { %p854_p8 = scmp.ne.s32.totalorder %s1087_s29, %s853_s7  ;;  %p858_p12 = scmp.lt.u32.totalorder %s1087_s29, %s1138_s3 }
 0x115   : > { %p859_p13 = scmp.lt.u32.totalorder %s857_s11, %s853_s7  ;;  %p861_p1 = scmp.lt.u32.totalorder %s853_s7, %s1087_s29 }
 0x116   : > { %p855_p10 = pnand %p854_p8, %p981_p5 }
 0x117   : > { %p860_p0 = por %p859_p13, %p858_p12 }
 0x118   : > { %p856_p11 = pneg %p855_p10 }
 0x119   : > { %p862_p2 = por %p861_p1, %p860_p0 }
 0x11b   : > { %p863_p3 = pnand %p862_p2, %p856_p11 }
 0x11d   : > { %866 = shalt.err (!%p863_p3)
}
 0x11e   : > { %s920_s21 = smov 128   ;;  %s921_s26 = smov 8  }
 0x11f   : > { %782 = dma.vmem_to_hbm [thread:$0]  (%p981_p5), %s1082_s23, 512, %s1087_s29, %s621_s30, %s920_s21, %s920_s21, %s921_s26  }
 0x120 PF: > { %p788_p4 = scmp.ge.s32.totalorder %s917_s17, 2  ;;  %s650_s27 = sand.u32 1, %s897_s12  }
 0x121   : > { %s651_s28 = scalar_lea.sflag [#allocation4], %s650_s27 }
 0x122   : > { %p785_p6 = pnand %p788_p4, %p992_p9 }
 0x124   : > { %892 = dma.done.wait (!%p785_p6), %s651_s28, 512  }
 0x125   : > { %894 = vsyncadd (!%p785_p6), %s651_s28, 4294966784  ;;  %s16_s17 = sadd.s32 1, %s917_s17   ;;  %s1141_s12 = smov %s901_s13 }
 0x126   : > { %p13_p7 = scmp.ge.s32.totalorder %s16_s17, 6   ;;  %s1142_s13 = smov %s905_s14 }
 0x127   : > { %s1143_s14 = smov %s990_s24  ;;  %s1144_s15 = smov %s913_s16 }
 0x128   : > { %s1145_s16 = smov %s1147_s20  ;;  %15 = sbr.rel (!%p13_p7) target bundleno = 4 (0x4), region = 119 }
 0x12f   :  { %656 = vsyncpa [#allocation4], 1 }
 0x130   :  { %658 = vsyncpa [#allocation4 + $0x1], 1 }

</bundles_post_ra>
